<compile_context>
chip_gen: v7x
topology: tpu7x:2x2x1
jax: 0.10.0
libtpu: 0.0.40
codegen_flags: <defaults>
</compile_context>

<pallas_src>
import jax
import jax.numpy as jnp
from jax.experimental import pallas as pl
from jax.experimental.pallas import tpu as pltpu


_TARGET_TILE_BYTES = 4 * 1024 * 1024   # ~4 MiB of x per grid step (HBM-roofline sweet spot)


def _round_up(x, m):
    return -(-x // m) * m


def _cdiv(a, b):
    return -(-a // b)


def _sublanes(itemsize):
    # Sub-32-bit dtypes pack along sublanes: f32 -> 8, bf16/f16 -> 16, int8/fp8 -> 32.
    return {4: 8, 2: 16, 1: 32}.get(int(itemsize), 8)


def _vmem_budget():
    """Per-generation (working-set budget, vmem_limit_bytes)."""
    vmem_cap = 64 * 1024 * 1024                      # conservative default (v7x per-TC)
    try:
        info = pltpu.get_tpu_info()
        vmem_cap = int(getattr(info, "vmem_capacity_bytes", vmem_cap))
    except Exception:
        pass
    if vmem_cap >= 128 * 1024 * 1024:                # v5e / v6e: 128 MiB physical VMEM
        return 48 * 1024 * 1024, 64 * 1024 * 1024
    return 40 * 1024 * 1024, 48 * 1024 * 1024        # v7x: 64 MiB physical per TensorCore


def _triple_pe_kernel(x_ref, row_ref, bat_ref, o_ref):
    # x_ref/o_ref: (tile_f, B, tile_d)
    # row_ref:     (tile_f, tile_d)   -> broadcast over batch (sublane axis)
    # bat_ref:     (B, tile_d)        -> broadcast over features (leading axis)
    # Promote-then-round: add in f32, cast back to x dtype (matches torch's
    # in-place add semantics when x is a narrow dtype; v5e VPU has no bf16 ALU
    # so the upcast is mandatory there anyway).
    x = x_ref[...].astype(jnp.float32)
    row = row_ref[...].astype(jnp.float32)[:, None, :]
    bat = bat_ref[...].astype(jnp.float32)[None, :, :]
    o_ref[...] = (x + row + bat).astype(o_ref.dtype)


def _choose_tiles(num_features, batch, d_model, x_itemsize, enc_itemsize, budget):
    """Pick (tile_f, tile_d) with dtype-correct padded-VMEM accounting for all operands."""
    sub_x = _sublanes(x_itemsize)
    sub_enc = _sublanes(enc_itemsize)
    pad_b_x = _round_up(batch, sub_x)
    pad_b_enc = _round_up(batch, sub_enc)

    def working_set(tile_f, tile_d):
        pad_d = _round_up(tile_d, 128)
        x_blk = tile_f * pad_b_x * pad_d * x_itemsize
        row_blk = _round_up(max(tile_f, 1), sub_enc) * pad_d * enc_itemsize
        bat_blk = pad_b_enc * pad_d * enc_itemsize
        # x in + x out (same size/dtype) + row_enc + bat_enc, each double-buffered.
        return 2 * (2 * x_blk + row_blk + bat_blk)

    # (1) Last-dim tiling fallback: if even a single full-D feature row busts the
    #     budget (huge batch * d_model), tile D in lane-dense multiples of 128
    #     instead of degrading to tile_f=1 / failing to fit on v7x.
    tile_d = d_model
    if working_set(1, d_model) > budget and d_model > 128:
        tile_d = 128
        while tile_d * 2 < d_model and working_set(1, tile_d * 2) <= budget // 2:
            tile_d *= 2

    # (2) Feature-axis tile: as many rows as fit the VMEM budget, capped by a
    #     multi-MiB HBM target per grid step.
    pad_d = _round_up(tile_d, 128)
    per_row = 2 * (2 * pad_b_x * pad_d * x_itemsize + pad_d * enc_itemsize)
    fixed = 2 * pad_b_enc * pad_d * enc_itemsize
    max_rows = max(1, (budget - fixed) // max(per_row, 1))
    target_rows = max(1, _TARGET_TILE_BYTES // max(batch * tile_d * x_itemsize, 1))
    tile_f = max(1, min(num_features, max_rows, target_rows))
    if tile_f >= 8:
        tile_f -= tile_f % 8

    # (3) Megacore balance: even, balanced feature-step counts so v7x's two
    #     TensorCores get equal DMA work (no-op on single-TC v5e/v6e).
    if num_features >= 16:
        n = _cdiv(num_features, tile_f)
        if n % 2:
            n += 1
        tile_f = _cdiv(num_features, n)

    # (4) row_enc's leading dim is its *sublane* dim: keep blocks sublane-aligned
    #     (or full-extent) so the (8,128) tiling constraint is satisfied.
    if tile_f < num_features:
        tile_f = min(_round_up(tile_f, sub_enc), num_features)

    return max(1, min(tile_f, num_features)), max(1, min(tile_d, d_model))


def precompute_row_encoding(ft_table, tk_table, feature_types, n_tickers, d_model,
                            dtype=jnp.float32):
    """[F, D] encoding for channels 0::3 (feature type) and 2::3 (ticker).

    Depends only on the embedding tables -> build once per model, not per step.
    Uses a contiguous stack+reshape interleave instead of strided scatters.
    """
    third = d_model // 3
    row_ft = jnp.repeat(ft_table.astype(jnp.float32), n_tickers, axis=0)      # [F, third]
    row_tk = jnp.tile(tk_table.astype(jnp.float32), (feature_types, 1))       # [F, third]
    zeros = jnp.zeros_like(row_ft)
    row_enc = jnp.stack([row_ft, zeros, row_tk], axis=-1).reshape(
        feature_types * n_tickers, 3 * third)
    if d_model > 3 * third:  # trailing channels receive no encoding (matches torch)
        pad = jnp.zeros((row_enc.shape[0], d_model - 3 * third), jnp.float32)
        row_enc = jnp.concatenate([row_enc, pad], axis=-1)
    return row_enc.astype(dtype)


def _build_batch_encoding(time_table, time_indices, d_model, dtype=jnp.float32):
    """[B, D] encoding: time embedding on channels 1::3, zeros elsewhere."""
    third = d_model // 3
    t = time_table[time_indices].astype(jnp.float32)                          # [B, third]
    z = jnp.zeros_like(t)
    bat_enc = jnp.stack([z, t, z], axis=-1).reshape(t.shape[0], 3 * third)
    if d_model > 3 * third:
        pad = jnp.zeros((bat_enc.shape[0], d_model - 3 * third), jnp.float32)
        bat_enc = jnp.concatenate([bat_enc, pad], axis=-1)
    return bat_enc.astype(dtype)


def triple_positional_encoding(x, time_indices, ft_table, time_table, tk_table,
                               feature_types, *, row_enc=None, tile_f=None,
                               tile_d=None, min_pallas_bytes=256 * 1024):
    """Pallas equivalent of TriplePositionalEncoding.forward (eval mode)."""
    num_features, batch, d_model = x.shape
    n_tickers = num_features // feature_types

    # Stream encodings in x.dtype for narrow float activations (halves their
    # HBM + VMEM cost; result is rounded to x.dtype anyway). Keep f32 otherwise.
    enc_dtype = (x.dtype if (jnp.issubdtype(x.dtype, jnp.floating)
                             and jnp.dtype(x.dtype).itemsize < 4)
                 else jnp.float32)
    enc_itemsize = jnp.dtype(enc_dtype).itemsize

    if row_enc is None:
        row_enc = precompute_row_encoding(ft_table, tk_table, feature_types,
                                          n_tickers, d_model, dtype=enc_dtype)
    else:
        row_enc = row_enc.astype(enc_dtype)
    bat_enc = _build_batch_encoding(time_table, time_indices, d_model, dtype=enc_dtype)

    # Small activations: pallas_call launch + per-step overhead dwarfs a few
    # KiB of elementwise work that XLA fuses for free.
    x_bytes = x.size * x.dtype.itemsize
    if x_bytes < min_pallas_bytes:
        out = (x.astype(jnp.float32)
               + row_enc.astype(jnp.float32)[:, None, :]
               + bat_enc.astype(jnp.float32)[None, :, :]).astype(x.dtype)
        return out

    budget, vmem_limit = _vmem_budget()
    auto_f, auto_d = _choose_tiles(num_features, batch, d_model,
                                   x.dtype.itemsize, enc_itemsize, budget)
    tile_f = auto_f if tile_f is None else max(1, min(int(tile_f), num_features))
    tile_d = auto_d if tile_d is None else max(1, min(int(tile_d), d_model))

    # Ceil-div grid: partial tail blocks are fine (elementwise; OOB writes masked).
    grid = (pl.cdiv(num_features, tile_f), pl.cdiv(d_model, tile_d))

    # Bandwidth-heavy custom call: hint XLA so surrounding ops schedule around it.
    cost = pl.CostEstimate(
        flops=2 * num_features * batch * d_model,
        transcendentals=0,
        bytes_accessed=(2 * x_bytes
                        + num_features * d_model * enc_itemsize
                        + batch * d_model * enc_itemsize))

    out = pl.pallas_call(
        _triple_pe_kernel,
        out_shape=jax.ShapeDtypeStruct(x.shape, x.dtype),
        grid_spec=pltpu.PrefetchScalarGridSpec(
            num_scalar_prefetch=0,
            grid=grid,
            in_specs=[
                pl.BlockSpec((tile_f, batch, tile_d), lambda i, j: (i, 0, j)),
                pl.BlockSpec((tile_f, tile_d), lambda i, j: (i, j)),        # row_enc, 2-D
                pl.BlockSpec((batch, tile_d), lambda i, j: (0, j)),         # bat_enc, 2-D
            ],
            out_specs=pl.BlockSpec((tile_f, batch, tile_d), lambda i, j: (i, 0, j)),
        ),
        # The PyTorch op is in-place (x += enc): alias the output onto x to
        # avoid an extra F*B*D HBM allocation / defensive copy under jit.
        input_output_aliases={0: 0},
        cost_estimate=cost,
        compiler_params=pltpu.CompilerParams(
            dimension_semantics=("parallel", "parallel"),
            vmem_limit_bytes=vmem_limit,
        ),
    )(x, row_enc, bat_enc)

    # TODO(synk): nn.Dropout(p=0.1) omitted — identity in eval mode; training-
    # mode dropout would use pltpu.prng_seed/prng_random_bits masking in-kernel.
    return out


def _reference_forward(x, time_indices, ft_table, time_table, tk_table, feature_types):
    """Pure-JAX reference mimicking the PyTorch strided in-place adds."""
    num_features, _, d_model = x.shape
    n_tickers = num_features // feature_types
    third = d_model // 3
    r = x
    r = r.at[:, :, 0:third * 3:3].add(
        jnp.repeat(ft_table, n_tickers, axis=0)[:, None, :])
    r = r.at[:, :, 1:third * 3:3].add(time_table[time_indices][None, :, :])
    r = r.at[:, :, 2:third * 3:3].add(
        jnp.tile(tk_table, (feature_types, 1))[:, None, :])
    return r


if __name__ == "__main__":
    # Small but layout-friendly demo shapes:
    #   d_model = 384 = 3*128 -> divisible by 3 AND lane-dense (multiple of 128)
    #   batch   = 8           -> full (8,128) sublane packing of the (B, D) slab
    d_model = 384
    feature_types = 2
    n_tickers = 8
    max_time_steps = 24
    num_features = feature_types * n_tickers    # 16 (seq dim of x)
    batch = 8

    key = jax.random.PRNGKey(0)
    kx, kft, ktm, ktk, kti = jax.random.split(key, 5)

    third = d_model // 3
    # Deterministic "embedding weights" (nn.Embedding default ~ N(0,1)).
    ft_table = jax.random.normal(kft, (feature_types, third), jnp.float32)
    time_table = jax.random.normal(ktm, (max_time_steps, third), jnp.float32)
    tk_table = jax.random.normal(ktk, (n_tickers, third), jnp.float32)

    x = jax.random.normal(kx, (num_features, batch, d_model), jnp.float32)
    time_indices = jax.random.randint(kti, (batch,), 0, max_time_steps)

    # row_enc depends only on the tables -> precompute once (hoisted out of forward).
    row_enc = precompute_row_encoding(ft_table, tk_table, feature_types,
                                      n_tickers, d_model)

    # Case 1: auto-tiled path (F=16 splits into 2 balanced, sublane-aligned steps).
    out = triple_positional_encoding(
        x, time_indices, ft_table, time_table, tk_table, feature_types,
        row_enc=row_enc,
        min_pallas_bytes=0)   # force the Pallas path at demo scale for this test
    out = jax.block_until_ready(out)
    ref = _reference_forward(x, time_indices, ft_table, time_table, tk_table,
                             feature_types)
    assert out.shape == (num_features, batch, d_model)
    assert jnp.allclose(out, ref, atol=1e-5, rtol=1e-5)

    # Case 2: partial tail block (num_features % tile_f != 0) — exercises the
    # masked-OOB-write path together with input/output aliasing.
    feature_types2 = 3
    num_features2 = feature_types2 * n_tickers                 # 24
    ft_table2 = jax.random.normal(kft, (feature_types2, third), jnp.float32)
    x2 = jax.random.normal(kx, (num_features2, batch, d_model), jnp.float32)
    out2 = triple_positional_encoding(
        x2, time_indices, ft_table2, time_table, tk_table, feature_types2,
        tile_f=16,            # grid_f = cdiv(24, 16) = 2 with an 8-row tail
        min_pallas_bytes=0)
    out2 = jax.block_until_ready(out2)
    ref2 = _reference_forward(x2, time_indices, ft_table2, time_table, tk_table,
                              feature_types2)
    assert jnp.allclose(out2, ref2, atol=1e-5, rtol=1e-5)

    print("KERNEL_OK")
</pallas_src>

<mosaic_0001>
module attributes {stable_mosaic.version = 11 : i64} {
  func.func @_triple_pe_kernel(%arg0: i32, %arg1: i32, %arg2: memref<8x8x384xf32, #tpu.memory_space<vmem>>, %arg3: memref<8x384xf32, #tpu.memory_space<vmem>>, %arg4: memref<8x384xf32, #tpu.memory_space<vmem>>, %arg5: memref<8x8x384xf32, #tpu.memory_space<vmem>>) attributes {dimension_semantics = [#tpu.dimension_semantics<parallel>, #tpu.dimension_semantics<parallel>], iteration_bounds = array<i64: 2, 1>, scalar_prefetch = 0 : i64, scratch_operands = 0 : i64, tpu.core_type = #tpu.core_type<tc>, window_params = [{transform_indices = @transform_0, window_bounds = array<i64: 8, 8, 384>}, {transform_indices = @transform_1, window_bounds = array<i64: 8, 384>}, {transform_indices = @transform_2, window_bounds = array<i64: 8, 384>}, {transform_indices = @transform_3, window_bounds = array<i64: 8, 8, 384>}]} {
    %c0 = arith.constant 0 : index
    %c0_0 = arith.constant 0 : index
    %c0_1 = arith.constant 0 : index
    %0 = vector.load %arg2[%c0, %c0_0, %c0_1] : memref<8x8x384xf32, #tpu.memory_space<vmem>>, vector<8x8x384xf32>
    %c0_2 = arith.constant 0 : index
    %c0_3 = arith.constant 0 : index
    %1 = vector.load %arg3[%c0_2, %c0_3] : memref<8x384xf32, #tpu.memory_space<vmem>>, vector<8x384xf32>
    %2 = vector.shape_cast %1 : vector<8x384xf32> to vector<8x1x384xf32>
    %c0_4 = arith.constant 0 : index
    %c0_5 = arith.constant 0 : index
    %3 = vector.load %arg4[%c0_4, %c0_5] : memref<8x384xf32, #tpu.memory_space<vmem>>, vector<8x384xf32>
    %4 = vector.shape_cast %3 : vector<8x384xf32> to vector<1x8x384xf32>
    %5 = vector.broadcast %2 : vector<8x1x384xf32> to vector<8x8x384xf32>
    %6 = arith.addf %0, %5 : vector<8x8x384xf32>
    %7 = vector.broadcast %4 : vector<1x8x384xf32> to vector<8x8x384xf32>
    %8 = arith.addf %6, %7 : vector<8x8x384xf32>
    %c0_6 = arith.constant 0 : index
    %c0_7 = arith.constant 0 : index
    %c0_8 = arith.constant 0 : index
    %9 = vector.load %arg5[%c0_6, %c0_7, %c0_8] : memref<8x8x384xf32, #tpu.memory_space<vmem>>, vector<8x8x384xf32>
    tpu.vector_store %arg5[%c0_6, %c0_7, %c0_8], %8 {strides = array<i32>} : memref<8x8x384xf32, #tpu.memory_space<vmem>>, vector<8x8x384xf32>,
    return
  }
  func.func @transform_0(%arg0: i32, %arg1: i32) -> (i32, i32, i32) {
    %c0_i32 = arith.constant 0 : i32
    %c0_i32_0 = arith.constant 0 : i32
    return %arg0, %c0_i32, %arg1 : i32, i32, i32
  }
  func.func @transform_1(%arg0: i32, %arg1: i32) -> (i32, i32) {
    %c0_i32 = arith.constant 0 : i32
    return %arg0, %arg1 : i32, i32
  }
  func.func @transform_2(%arg0: i32, %arg1: i32) -> (i32, i32) {
    %c0_i32 = arith.constant 0 : i32
    %c0_i32_0 = arith.constant 0 : i32
    return %c0_i32, %arg1 : i32, i32
  }
  func.func @transform_3(%arg0: i32, %arg1: i32) -> (i32, i32, i32) {
    %c0_i32 = arith.constant 0 : i32
    %c0_i32_0 = arith.constant 0 : i32
    return %arg0, %c0_i32, %arg1 : i32, i32, i32
  }
}

</mosaic_0001>

<bundles_post_ra>
// kernel: tpu_custom_call.1
= control target key start
LH: loop header
LB: loop body
LE: loop exit
PB: predicated region body
PF: predicated region fallthrough
CT: control target
= control target key end

     0   :  { %8 = vsyncpa [#allocation3], 0  ;;  %s1247_s0 = inlined_call_operand.hbm [shape: f32[16,8,384], index: 0, kind: input, shape index: {}, may-alias: {0,3}]   ;;  %s1248_s1 = inlined_call_operand.vmem [shape: f32[16,384], index: 1, kind: input, shape index: {}]   ;;  %s1249_s2 = inlined_call_operand.vmem [shape: f32[8,384], index: 2, kind: input, shape index: {}]   ;;  %s1250_s3 = inlined_call_operand.hbm [shape: f32[16,8,384], index: 3, kind: output, shape index: {}, may-alias: {0,3}]  }
   0x1   :  { %10 = vsyncpa [#allocation3 + $0x1], 0 }
   0x2   :  { %11 = vsyncpa [#allocation4], 0 }
   0x3   :  { %13 = vsyncpa [#allocation4 + $0x1], 0  ;;  %s931_s12 = smov 0   ;;  %s933_s13 = smov 0  }
   0x4   :  { %s935_s14 = smov 0   ;;  %s937_s15 = smov 0  }
   0x5   :  { %s939_s16 = smov 0   ;;  %s941_s17 = smov 0  }
   0x6 LB: > { %s699_s18 = sadd.s32 4294967295, %s902_s17   ;;  %s700_s19 = sadd.s32 4294967294, %s902_s17   ;;  %s902_s17 = sphi %s941_s17, %s19_s17   ;;  %s898_s16 = sphi %s939_s16, %s1265_s16   ;;  %s894_s15 = sphi %s937_s15, %s1264_s15   ;;  %s890_s14 = sphi %s935_s14, %s1263_s14   ;;  %s886_s13 = sphi %s933_s13, %s1262_s13   ;;  %s882_s12 = sphi %s931_s12, %s1261_s12  }
   0x7   : > { %s31_s20 = sadd.s32 1, %s898_s16  ;;  %s40_s21 = sadd.s32 1, %s890_s14 }
   0x8   : > { %p33_p0 = scmp.ge.s32.totalorder %s31_s20, 2  ;;  %p47_p1 = scmp.ne.s32.totalorder %s890_s14, %s886_s13 }
   0x9   : > { %p48_p2 = scmp.eq.s32.totalorder %s902_s17, 0  ;;  %p53_p3 = scmp.ne.s32.totalorder %s886_s13, %s882_s12 }
   0xa   : > { %s1267_s20 = smov (%p33_p0, %s31_s20), 0  ;;  %p54_p5 = scmp.eq.s32.totalorder %s699_s18, 0 }
   0xb   : > { %p972_p4 = por %p48_p2, %p47_p1  ;;  %s35_s23 = ssub.s32 %s898_s16, %s1267_s20 }
   0xc   : > { %p133_p6 = scmp.eq.s32.totalorder %s699_s18, 1  ;;  %p38_p7 = scmp.eq.s32.totalorder %s35_s23, 0 }
   0xd   : > { %p978_p8 = por %p54_p5, %p53_p3  ;;  %p139_p10 = scmp.eq.s32.totalorder %s700_s19, 1 }
   0xe   : > { %p982_p9 = por %p133_p6, %p47_p1  ;;  %p731_p13 = scmp.lt.s32.totalorder %s902_s17, 2 }
   0xf   : > { %s987_s26 = scalar_select %p38_p7, %s890_s14, %s40_s21  }
  0x10   : > { %s1254_s25 = scalar_select %p982_p9, 1, 0 }
  0x11   : > { %p989_p11 = por %p139_p10, %p53_p3  ;;  %s168_s28 = sand.u32 1, %s890_s14  }
  0x12   : > { %s714_s29 = smul.u32 192, %s168_s28  ;;  %p999_p0 = pnand %p731_p13, %p972_p4 }
  0x13   : > { %s1255_s27 = scalar_select %p989_p11, 1, 0 }
  0x14   : > { %s715_s30 = smul.u32 3072, %s898_s16  ;;  %s172_s8 = scalar_lea.vmem [#allocation2], %s714_s29 }
  0x15   : > { %s182_s9 = sshll.u32 %s172_s8, 4  ;;  %s1011_s10 = scalar_lea.sflag [#allocation3], %s168_s28  ;;  %s1008_s9 = int_to_ptr.vmem [resolvable:$true] %s182_s9 }
  0x16   : > { %s1006_s7 = scalar_lea.hbm %s1247_s0, %s715_s30  ;;  %p792_p3 = pneg %p999_p0 }
  0x17   : > { %s790_s11 = scalar_lea.hbm %s1006_s7, 3072  ;;  %s795_s21 = scalar_lea.hbm %s1247_s0, 6144 }
  0x18   : > { %p791_p2 = scmp.ne.s32.totalorder %s1006_s7, %s790_s11  ;;  %p796_p6 = scmp.lt.u32.totalorder %s1006_s7, %s1247_s0 }
  0x19   : > { %p797_p7 = scmp.lt.u32.totalorder %s795_s21, %s790_s11  ;;  %p799_p13 = scmp.lt.u32.totalorder %s790_s11, %s1006_s7 }
  0x1a   : > { %p793_p4 = pnand %p792_p3, %p791_p2 }
  0x1b   : > { %p798_p10 = por %p797_p7, %p796_p6 }
  0x1c   : > { %p794_p5 = pneg %p793_p4 }
  0x1d   : > { %p800_p12 = por %p799_p13, %p798_p10 }
  0x1f   : > { %p801_p1 = pnand %p800_p12, %p794_p5 }
  0x21   : > { %804 = shalt.err (!%p801_p1)
}
  0x22   : > { %s805_s28 = scalar_lea.vmem %s1008_s9, 3072  ;;  %s904_s29 = smov [#allocation2]  }
  0x23   : > { %p806_p2 = scmp.ne.s32.totalorder %s1008_s9, %s805_s28  ;;  %s810_s30 = sshll.u32 %s904_s29, 4  ;;  %s811_s30 = int_to_ptr.vmem [resolvable:$false] %s810_s30 }
  0x24   : > { %s812_s5 = scalar_lea.vmem %s811_s30, 6144  ;;  %p813_p9 = scmp.lt.s32.totalorder %s1008_s9, %s811_s30 }
  0x25   : > { %p808_p4 = pnand %p806_p2, %p792_p3  ;;  %p814_p6 = scmp.lt.s32.totalorder %s812_s5, %s805_s28 }
  0x27   : > { %p809_p11 = pneg %p808_p4  ;;  %p815_p7 = por %p814_p6, %p813_p9 }
  0x29   : > { %p816_p10 = pnand %p815_p7, %p809_p11 }
  0x2b   : > { %819 = shalt.err (!%p816_p10)
}
  0x2c   : > { %s905_s6 = smov 384   ;;  %s906_s8 = smov 24  }
  0x2d   : > { %726 = dma.hbm_to_vmem [thread:$0]  (!%p999_p0), %s1006_s7, 3072, %s1008_s9, %s1011_s10, %s905_s6, %s905_s6, %s906_s8  }
  0x2e   : > { %p203_p12 = scmp.lt.s32.totalorder %s902_s17, 3  ;;  %p1257_p1 = scmp.ge.s32.totalorder %s902_s17, 1 }
  0x30   : > { %p204_p3 = pnand %p1257_p1, %p203_p12 }
  0x31   : > { %s1043_s11 = sand.u32 (!%p204_p3), 1, %s886_s13  }
  0x32   : > { %207 = sbr.rel (%p204_p3) target bundleno = 112 (0x70), region = 32  ;;  %s210_s19 = scalar_lea.sflag (!%p204_p3), [#allocation3], %s1043_s11 }
  0x33   : > { %s716_s18 = smul.u32 (!%p204_p3), 192, %s1043_s11 }
  0x35   : > { %s1049_s21 = scalar_lea.vmem (!%p204_p3), [#allocation2], %s716_s18 }
  0x39   : > { %873 = dma.done.wait (%p978_p8), %s210_s19, 3072  }
  0x3a   : > { %875 = vsyncadd (%p978_p8), %s210_s19, 4294964224  ;;  %p253_p9 = scmp.lt.s32.totalorder %s894_s15, 1  ;;  %v306_v0 = vlaneseq  ;;  %v907_v1 = vmov 1966171168   ;;  %v270_v17 = vld [vmem:[%s1049_s21] sm:$0xff]  ;;  %v271_v20 = vld [vmem:[%s1049_s21 + $0x8] sm:$0xff] }
  0x3b   : > { %v304_v2 = vunpack.c.l.s4 %v907_v1  ;;  %v272_v21 = vld [vmem:[%s1049_s21 + $0x10] sm:$0xff]  ;;  %v273_v22 = vld [vmem:[%s1049_s21 + $0x18] sm:$0xff]  ;;  %v274_v29 = vld [vmem:[%s1049_s21 + $0x20] sm:$0xff]  ;;  %s1117_s6 = scalar_lea.vmem [#allocation5], %s716_s18  ;;  %s718_s8 = smul.u32 3072, %s894_s15 }
  0x3c   : > { %s254_s4 = scalar_select %p253_p9, %s894_s15, 1  ;;  %v307_v3 = vshrl.u32 %v306_v0, 7  ;;  %v275_v30 = vld [vmem:[%s1049_s21 + $0x28] sm:$0xff]  ;;  %v1087_v31 = vld [vmem:[%s1249_s2] sm:$0xff]  ;;  %v1097_v33 = vld [vmem:[%s1249_s2 + $0x10] sm:$0xff] }
  0x3d   : > { %v305_v4 = vunpack.c.0.s8 %v304_v2  ;;  %v1092_v32 = vld [vmem:[%s1249_s2 + $0x8] sm:$0xff]  ;;  %v276_v42 = vld [vmem:[%s1049_s21 + $0x30] sm:$0xff]  ;;  %v277_v43 = vld [vmem:[%s1049_s21 + $0x38] sm:$0xff]  ;;  %s579_s18 = sshll.u32 %s1117_s6, 4  ;;  %p1258_p11 = scmp.ne.s32.totalorder %s1254_s25, 0  ;;  %s1190_s18 = int_to_ptr.vmem [resolvable:$true] %s579_s18 }
  0x3e   : > { %s717_s7 = smul.u32 24, %s254_s4  ;;  %v1064_v10 = vsub.s32 0, %v307_v3  ;;  %v1066_v13 = vsub.s32 1, %v307_v3  ;;  %v1068_v14 = vsub.s32 2, %v307_v3  ;;  %v278_v52 = vld [vmem:[%s1049_s21 + $0x40] sm:$0xff]  ;;  %v279_v57 = vld [vmem:[%s1049_s21 + $0x48] sm:$0xff] }
  0x3f   : > { %v1057_v5 = vsub.s32 %v305_v4, %v307_v3  ;;  %v280_v58 = vld [vmem:[%s1049_s21 + $0x50] sm:$0xff]  ;;  %v281_v59 = vld [vmem:[%s1049_s21 + $0x58] sm:$0xff]  ;;  %s563_s4 = scalar_lea.sflag [#allocation4], %s1043_s11  ;;  %s908_s9 = smov [#allocation5]  }
  0x40   : > { %s260_s22 = scalar_lea.vmem %s1248_s1, %s717_s7  ;;  %s820_s7 = scalar_lea.vmem %s1190_s18, 3072 }
  0x41   : > { %v296_v6 = vld [vmem:[%s260_s22 + $0x10] sm:$0xff]  ;;  %v786_v7 = vld [vmem:[%s260_s22] ss:$8 sps:$4 sm:$0xff]   ;;  %v788_v16 = vld [vmem:[%s260_s22 + $0x4] ss:$8 sps:$4 sm:$0xff]   ;;  %p821_p8 = scmp.ne.s32.totalorder %s1190_s18, %s820_s7  ;;  %s824_s10 = sshll.u32 %s908_s9, 4  ;;  %s825_s10 = int_to_ptr.vmem [resolvable:$false] %s824_s10 }
  0x42   : > { %v323_v8 = vrot.slane %v296_v6, %v1057_v5  ;;  %v309_v9 = vrot.slane %v786_v7, %v1057_v5  ;;  %v302_v11 = vcombine.high %v296_v6, %v296_v6  ;;  %v316_v23 = vrot.slane %v788_v16, %v1057_v5  ;;  %s826_s22 = scalar_lea.vmem %s825_s10, 6144  ;;  %p827_p13 = scmp.lt.s32.totalorder %s1190_s18, %s825_s10 }
  0x43   : > { %p822_p0 = pnand %p821_p8, %p1258_p11  ;;  %p828_p2 = scmp.lt.s32.totalorder %s826_s22, %s820_s7 }
  0x44   : > { %v331_v12 = vcombine.low %v309_v9, %v323_v8  ;;  %v332_v15 = vcombine.high %v309_v9, %v323_v8  ;;  %v330_v24 = vrot.slane %v302_v11, %v1057_v5  ;;  %v282_v9 = vld [vmem:[%s1049_s21 + $0x60] sm:$0xff] }
  0x45   : > { %p823_p5 = pneg %p822_p0  ;;  %p829_p4 = por %p828_p2, %p827_p13 }
  0x46   : > { %v341_v18 = vrot.slane %v331_v12, %v1057_v5  ;;  %v355_v19 = vrot.slane %v332_v15, %v1057_v5  ;;  %v333_v2 = vcombine.low %v316_v23, %v330_v24  ;;  %v334_v3 = vcombine.high %v316_v23, %v330_v24 }
  0x47   : > { %p830_p6 = pnand %p829_p4, %p823_p5 }
  0x48   : > { %v373_v25 = vrot.slane %v341_v18, %v1064_v10  ;;  %v377_v26 = vrot.slane %v341_v18, %v1066_v13  ;;  %v381_v27 = vrot.slane %v341_v18, %v1068_v14  ;;  %v385_v28 = vrot.slane %v355_v19, %v1064_v10 }
  0x49   : > { %v389_v34 = vrot.slane %v355_v19, %v1066_v13  ;;  %v393_v35 = vrot.slane %v355_v19, %v1068_v14  ;;  %v363_v36 = vcombine.high %v341_v18, %v341_v18  ;;  %v365_v37 = vcombine.high %v355_v19, %v355_v19  ;;  %v283_v19 = vld [vmem:[%s1049_s21 + $0x68] sm:$0xff] }
  0x4a   : > { %v490_v38 = vadd.f32 %v373_v25, %v270_v17  ;;  %v491_v39 = vadd.f32 %v377_v26, %v271_v20  ;;  %v492_v40 = vadd.f32 %v381_v27, %v272_v21  ;;  %v493_v41 = vadd.f32 %v385_v28, %v273_v22  ;;  %v284_v20 = vld [vmem:[%s1049_s21 + $0x70] sm:$0xff]  ;;  %v285_v21 = vld [vmem:[%s1049_s21 + $0x78] sm:$0xff]  ;;  %v286_v25 = vld [vmem:[%s1049_s21 + $0x80] sm:$0xff] }
  0x4b   : > { %v494_v44 = vadd.f32 %v389_v34, %v274_v29  ;;  %v495_v45 = vadd.f32 %v393_v35, %v275_v30  ;;  %v397_v46 = vrot.slane %v363_v36, %v1064_v10  ;;  %v401_v47 = vrot.slane %v363_v36, %v1066_v13  ;;  %v287_v26 = vld [vmem:[%s1049_s21 + $0x88] sm:$0xff] }
  0x4c   : > { %v514_v48 = vadd.f32 %v490_v38, %v1087_v31  ;;  %v515_v49 = vadd.f32 %v491_v39, %v1092_v32  ;;  %v516_v50 = vadd.f32 %v492_v40, %v1097_v33  ;;  %v517_v51 = vadd.f32 %v493_v41, %v1087_v31  ;;  %v288_v38 = vld [vmem:[%s1049_s21 + $0x90] sm:$0xff]  ;;  %v289_v39 = vld [vmem:[%s1049_s21 + $0x98] sm:$0xff] }
  0x4d   : > { %v518_v53 = vadd.f32 %v494_v44, %v1092_v32  ;;  %v519_v54 = vadd.f32 %v495_v45, %v1097_v33  ;;  %v496_v55 = vadd.f32 %v397_v46, %v276_v42  ;;  %v497_v56 = vadd.f32 %v401_v47, %v277_v43 }
  0x4e   : > { %538 = vst [vmem:[%s1117_s6] sm:$0xff] %v514_v48  ;;  %539 = vst [vmem:[%s1117_s6 + $0x8] sm:$0xff] %v515_v49  ;;  %v405_v60 = vrot.slane %v363_v36, %v1068_v14  ;;  %v409_v61 = vrot.slane %v365_v37, %v1064_v10  ;;  %v413_v62 = vrot.slane %v365_v37, %v1066_v13  ;;  %v290_v48 = vld [vmem:[%s1049_s21 + $0xa0] sm:$0xff] }
  0x4f   : > { %540 = vst [vmem:[%s1117_s6 + $0x10] sm:$0xff] %v516_v50  ;;  %541 = vst [vmem:[%s1117_s6 + $0x18] sm:$0xff] %v517_v51  ;;  %v417_v63 = vrot.slane %v365_v37, %v1068_v14  ;;  %v520_v0 = vadd.f32 %v496_v55, %v1087_v31  ;;  %v521_v1 = vadd.f32 %v497_v56, %v1092_v32  ;;  %v293_v55 = vld [vmem:[%s1049_s21 + $0xb8] sm:$0xff] }
  0x50   : > { %542 = vst [vmem:[%s1117_s6 + $0x20] sm:$0xff] %v518_v53  ;;  %543 = vst [vmem:[%s1117_s6 + $0x28] sm:$0xff] %v519_v54  ;;  %v498_v4 = vadd.f32 %v405_v60, %v278_v52  ;;  %v499_v6 = vadd.f32 %v409_v61, %v279_v57  ;;  %v500_v7 = vadd.f32 %v413_v62, %v280_v58  ;;  %v291_v53 = vld [vmem:[%s1049_s21 + $0xa8] sm:$0xff]  ;;  %v292_v54 = vld [vmem:[%s1049_s21 + $0xb0] sm:$0xff]  ;;  %s1188_s21 = scalar_lea.hbm %s1250_s3, %s718_s8 }
  0x51   : > { %v501_v8 = vadd.f32 %v417_v63, %v281_v59  ;;  %544 = vst [vmem:[%s1117_s6 + $0x30] sm:$0xff] %v520_v0  ;;  %545 = vst [vmem:[%s1117_s6 + $0x38] sm:$0xff] %v521_v1  ;;  %v348_v11 = vrot.slane %v333_v2, %v1057_v5  ;;  %v362_v12 = vrot.slane %v334_v3, %v1057_v5 }
  0x52   : > { %v522_v15 = vadd.f32 %v498_v4, %v1097_v33  ;;  %v523_v16 = vadd.f32 %v499_v6, %v1087_v31  ;;  %v524_v17 = vadd.f32 %v500_v7, %v1092_v32 }
  0x53   : > { %v525_v18 = vadd.f32 %v501_v8, %v1097_v33  ;;  %v421_v22 = vrot.slane %v348_v11, %v1064_v10  ;;  %v425_v23 = vrot.slane %v348_v11, %v1066_v13  ;;  %v429_v24 = vrot.slane %v348_v11, %v1068_v14 }
  0x54   : > { %v433_v5 = vrot.slane %v362_v12, %v1064_v10  ;;  %546 = vst [vmem:[%s1117_s6 + $0x40] sm:$0xff] %v522_v15  ;;  %547 = vst [vmem:[%s1117_s6 + $0x48] sm:$0xff] %v523_v16  ;;  %v437_v27 = vrot.slane %v362_v12, %v1066_v13  ;;  %v441_v28 = vrot.slane %v362_v12, %v1068_v14 }
  0x55   : > { %548 = vst [vmem:[%s1117_s6 + $0x50] sm:$0xff] %v524_v17  ;;  %549 = vst [vmem:[%s1117_s6 + $0x58] sm:$0xff] %v525_v18  ;;  %v364_v29 = vcombine.high %v348_v11, %v348_v11  ;;  %v366_v30 = vcombine.high %v362_v12, %v362_v12  ;;  %v502_v34 = vadd.f32 %v421_v22, %v282_v9 }
  0x56   : > { %v503_v35 = vadd.f32 %v425_v23, %v283_v19  ;;  %v504_v36 = vadd.f32 %v429_v24, %v284_v20  ;;  %v505_v37 = vadd.f32 %v433_v5, %v285_v21  ;;  %v506_v40 = vadd.f32 %v437_v27, %v286_v25 }
  0x57   : > { %v507_v41 = vadd.f32 %v441_v28, %v287_v26  ;;  %v445_v42 = vrot.slane %v364_v29, %v1064_v10  ;;  %v449_v43 = vrot.slane %v364_v29, %v1066_v13  ;;  %v526_v44 = vadd.f32 %v502_v34, %v1087_v31 }
  0x58   : > { %v527_v45 = vadd.f32 %v503_v35, %v1092_v32  ;;  %v528_v46 = vadd.f32 %v504_v36, %v1097_v33  ;;  %v529_v47 = vadd.f32 %v505_v37, %v1087_v31  ;;  %v530_v49 = vadd.f32 %v506_v40, %v1092_v32 }
  0x59   : > { %v531_v50 = vadd.f32 %v507_v41, %v1097_v33  ;;  %v508_v51 = vadd.f32 %v445_v42, %v288_v38  ;;  %v509_v52 = vadd.f32 %v449_v43, %v289_v39  ;;  %550 = vst [vmem:[%s1117_s6 + $0x60] sm:$0xff] %v526_v44  ;;  %v453_v56 = vrot.slane %v364_v29, %v1068_v14 }
  0x5a   : > { %551 = vst [vmem:[%s1117_s6 + $0x68] sm:$0xff] %v527_v45  ;;  %552 = vst [vmem:[%s1117_s6 + $0x70] sm:$0xff] %v528_v46  ;;  %v457_v57 = vrot.slane %v366_v30, %v1064_v10  ;;  %v461_v58 = vrot.slane %v366_v30, %v1066_v13  ;;  %v465_v59 = vrot.slane %v366_v30, %v1068_v14 }
  0x5b   : > { %553 = vst [vmem:[%s1117_s6 + $0x78] sm:$0xff] %v529_v47  ;;  %554 = vst [vmem:[%s1117_s6 + $0x80] sm:$0xff] %v530_v49  ;;  %v532_v60 = vadd.f32 %v508_v51, %v1087_v31  ;;  %v533_v61 = vadd.f32 %v509_v52, %v1092_v32  ;;  %v510_v62 = vadd.f32 %v453_v56, %v290_v48 }
  0x5c   : > { %555 = vst [vmem:[%s1117_s6 + $0x88] sm:$0xff] %v531_v50  ;;  %v511_v63 = vadd.f32 %v457_v57, %v291_v53  ;;  %v512_v0 = vadd.f32 %v461_v58, %v292_v54  ;;  %v513_v10 = vadd.f32 %v465_v59, %v293_v55 }
  0x5d   : > { %556 = vst [vmem:[%s1117_s6 + $0x90] sm:$0xff] %v532_v60  ;;  %557 = vst [vmem:[%s1117_s6 + $0x98] sm:$0xff] %v533_v61  ;;  %v534_v13 = vadd.f32 %v510_v62, %v1097_v33 }
  0x5e   : > { %v535_v14 = vadd.f32 %v511_v63, %v1087_v31  ;;  %v536_v1 = vadd.f32 %v512_v0, %v1092_v32  ;;  %v537_v2 = vadd.f32 %v513_v10, %v1097_v33 }
  0x5f   : > { %558 = vst [vmem:[%s1117_s6 + $0xa0] sm:$0xff] %v534_v13 }
  0x60   : > { %559 = vst [vmem:[%s1117_s6 + $0xa8] sm:$0xff] %v535_v14  ;;  %560 = vst [vmem:[%s1117_s6 + $0xb0] sm:$0xff] %v536_v1 }
  0x61   : > { %561 = vst [vmem:[%s1117_s6 + $0xb8] sm:$0xff] %v537_v2 }
  0x62   : > { %833 = shalt.err (!%p830_p6)
}
  0x63   : > { %s834_s24 = scalar_lea.hbm %s1188_s21, 3072  ;;  %s838_s29 = scalar_lea.hbm %s1250_s3, 6144 }
  0x64   : > { %p835_p7 = scmp.ne.s32.totalorder %s1188_s21, %s834_s24  ;;  %p839_p1 = scmp.lt.u32.totalorder %s1188_s21, %s1250_s3 }
  0x65   : > { %p840_p3 = scmp.lt.u32.totalorder %s838_s29, %s834_s24  ;;  %p842_p8 = scmp.lt.u32.totalorder %s834_s24, %s1188_s21 }
  0x66   : > { %p836_p10 = pnand %p835_p7, %p1258_p11 }
  0x67   : > { %p841_p9 = por %p840_p3, %p839_p1 }
  0x68   : > { %p837_p12 = pneg %p836_p10 }
  0x69   : > { %p843_p0 = por %p842_p8, %p841_p9 }
  0x6b   : > { %p844_p5 = pnand %p843_p0, %p837_p12 }
  0x6d   : > { %847 = shalt.err (!%p844_p5)
}
  0x6e   : > { %s909_s6 = smov 384   ;;  %s910_s8 = smov 24  }
  0x6f   : > { %721 = dma.vmem_to_hbm [thread:$0]  (%p1258_p11), %s1190_s18, 3072, %s1188_s21, %s563_s4, %s909_s6, %s909_s6, %s910_s8  }
  0x70 PF: > { %s594_s15 = sand.u32 1, %s882_s12   ;;  %p1259_p13 = scmp.ne.s32.totalorder %s1255_s27, 0 }
  0x71   : > { %p1260_p2 = scmp.ge.s32.totalorder %s902_s17, 2  ;;  %s595_s19 = scalar_lea.sflag [#allocation4], %s594_s15 }
  0x73   : > { %p728_p4 = pnand %p1260_p2, %p1259_p13 }
  0x75   : > { %877 = dma.done.wait (!%p728_p4), %s595_s19, 3072  }
  0x76   : > { %879 = vsyncadd (!%p728_p4), %s595_s19, 4294964224  ;;  %s19_s17 = sadd.s32 1, %s902_s17   ;;  %s1261_s12 = smov %s886_s13 }
  0x77   : > { %p16_p6 = scmp.ge.s32.totalorder %s19_s17, 4   ;;  %s1262_s13 = smov %s890_s14 }
  0x78   : > { %s1263_s14 = smov %s987_s26  ;;  %s1264_s15 = smov %s898_s16 }
  0x79   : > { %s1265_s16 = smov %s1267_s20  ;;  %18 = sbr.rel (!%p16_p6) target bundleno = 6 (0x6), region = 83 }
  0x80   :  { %600 = vsyncpa [#allocation3], 1 }
  0x81   :  { %602 = vsyncpa [#allocation3 + $0x1], 1 }
  0x82   :  { %603 = vsyncpa [#allocation4], 1 }
  0x83   :  { %605 = vsyncpa [#allocation4 + $0x1], 1 }

</bundles_post_ra>
